<compile_context>
chip_gen: v7x
topology: tpu7x:2x2x1
jax: 0.10.0
libtpu: 0.0.40
codegen_flags: <defaults>
</compile_context>

<pallas_src>
import jax
import jax.numpy as jnp
from jax.experimental import pallas as pl
from jax.experimental.pallas import tpu as pltpu


def _round_up(x, m):
    return (x + m - 1) // m * m


def _pack_params(params):
    """Pack all weights/biases into one (rows, 128) bf16 slab.

    Row layout (every segment starts at a multiple of 16 sublanes, bf16 tile):
      [0, sd_pad)          w1      (state_dim,128), zero-padded rows
      [sd_pad, +16)        b1      row 0 valid
      [sd_pad+16, +128)    w2      (128,64) zero-padded cols -> (128,128)
      [sd_pad+144, +16)    b2
      [sd_pad+160, +128)   w_head  concat(wp,wv)=(64,na+1), zero-padded -> (128,128)
      [sd_pad+288, +16)    b_head
    """
    state_dim = params["w1"].shape[0]
    num_actions = params["wp"].shape[1]
    assert num_actions + 1 <= 128, "fused head width must fit in 128 lanes"
    sd_pad = _round_up(state_dim, 16)          # bf16 sublane tile = 16

    def pad2(a, rows, cols):
        a = a.astype(jnp.bfloat16)
        return jnp.pad(a, ((0, rows - a.shape[0]), (0, cols - a.shape[1])))

    w_head = jnp.concatenate([params["wp"], params["wv"]], axis=1)   # (64, na+1)
    b_head = jnp.concatenate([params["bp"], params["bv"]], axis=1)   # (1, na+1)

    slab = jnp.concatenate([
        pad2(params["w1"], sd_pad, 128),
        pad2(params["b1"], 16, 128),
        pad2(params["w2"], 128, 128),
        pad2(params["b2"], 16, 128),
        pad2(w_head, 128, 128),
        pad2(b_head, 16, 128),
    ], axis=0)                                                       # (sd_pad+304, 128)

    offs = {
        "b1": sd_pad,
        "w2": sd_pad + 16,
        "b2": sd_pad + 144,
        "wh": sd_pad + 160,
        "bh": sd_pad + 288,
    }
    return slab, offs, sd_pad, num_actions


def _make_kernel(sd_pad, offs):
    o_b1, o_w2 = offs["b1"], offs["w2"]
    o_b2, o_wh, o_bh = offs["b2"], offs["wh"], offs["bh"]

    def kernel(x_ref, p_ref, out_ref):
        x = x_ref[...]                                               # (TB, sd_pad) bf16

        # shared layer 1: Linear(state_dim, 128) + ReLU  (bf16 MXU, f32 acc/VPU)
        h1 = jnp.dot(x, p_ref[0:sd_pad, :],
                     preferred_element_type=jnp.float32)
        h1 = jnp.maximum(h1 + p_ref[o_b1:o_b1 + 1, :].astype(jnp.float32), 0.0)

        # shared layer 2: Linear(128, 64) + ReLU (cols >= 64 are zero padding)
        h2 = jnp.dot(h1.astype(jnp.bfloat16), p_ref[o_w2:o_w2 + 128, :],
                     preferred_element_type=jnp.float32)
        h2 = jnp.maximum(h2 + p_ref[o_b2:o_b2 + 1, :].astype(jnp.float32), 0.0)

        # fused policy+value head: cols [0,na) = logits, col na = value,
        # remaining cols are zero padding.
        out = jnp.dot(h2.astype(jnp.bfloat16), p_ref[o_wh:o_wh + 128, :],
                      preferred_element_type=jnp.float32)
        out = out + p_ref[o_bh:o_bh + 1, :].astype(jnp.float32)
        out_ref[...] = out.astype(out_ref.dtype)                     # (TB, 128) bf16

    return kernel


def policy_value_forward(state, params, *, max_tile_b=1024):
    """state: (B, state_dim) float.  Returns (policy_logits (B,na) f32, value (B,1) f32)."""
    B, state_dim = state.shape
    slab, offs, sd_pad, num_actions = _pack_params(params)
    slab_rows = slab.shape[0]

    # Batch tiling: bf16 sublane tile is 16 rows.  Use big tiles to amortize
    # per-step overhead; on larger batches force >= 2 grid steps so v7x's
    # second TensorCore gets work (harmless elsewhere).
    b_pad = _round_up(B, 16)
    tile_b = min(b_pad, max_tile_b)
    if b_pad >= 256:
        tile_b = min(tile_b, _round_up((b_pad + 1) // 2, 16))
    b_pad = _round_up(b_pad, tile_b)
    grid = (b_pad // tile_b,)

    # Cast to bf16; skip the pad copy when shapes already line up.
    x = state.astype(jnp.bfloat16)
    if b_pad != B or sd_pad != state_dim:
        x = jnp.pad(x, ((0, b_pad - B), (0, sd_pad - state_dim)))

    kernel = _make_kernel(sd_pad, offs)
    cost = pl.CostEstimate(
        flops=2 * b_pad * (sd_pad * 128 + 128 * 128 + 128 * 128),
        transcendentals=0,
        bytes_accessed=2 * (b_pad * sd_pad + slab_rows * 128 + b_pad * 128),
    )

    def run(single_buffer_weights):
        w_spec_kwargs = (
            dict(pipeline_mode=pl.Buffered(1)) if single_buffer_weights else {}
        )
        n_w_bufs = 1 if single_buffer_weights else 2
        vmem_limit = max(
            4 << 20,
            2 * (2 * tile_b * sd_pad + 2 * tile_b * 128
                 + n_w_bufs * slab_rows * 128) + (1 << 20),
        )
        return pl.pallas_call(
            kernel,
            out_shape=jax.ShapeDtypeStruct((b_pad, 128), jnp.bfloat16),
            grid=grid,
            in_specs=[
                pl.BlockSpec((tile_b, sd_pad), lambda i: (i, 0)),      # state tiles
                pl.BlockSpec((slab_rows, 128), lambda i: (0, 0),       # resident weights
                             **w_spec_kwargs),
            ],
            out_specs=pl.BlockSpec((tile_b, 128), lambda i: (i, 0)),   # lane-dense out
            compiler_params=pltpu.CompilerParams(
                dimension_semantics=("parallel",),
                vmem_limit_bytes=int(vmem_limit),
            ),
            cost_estimate=cost,
        )(x, slab)

    try:
        out = run(True)
    except Exception:
        # Fallback for JAX versions that reject single-buffered pipeline_mode.
        out = run(False)

    policy_logits = out[:B, :num_actions].astype(jnp.float32)
    value = out[:B, num_actions:num_actions + 1].astype(jnp.float32)
    return policy_logits, value


def init_params(key, state_dim, num_actions):
    """Deterministic synthetic init (PyTorch-Linear-style uniform bounds)."""
    ks = jax.random.split(key, 8)

    def linear(kw, kb, fan_in, fan_out):
        bound = 1.0 / (fan_in ** 0.5)
        w = jax.random.uniform(kw, (fan_in, fan_out), jnp.float32, -bound, bound)
        b = jax.random.uniform(kb, (1, fan_out), jnp.float32, -bound, bound)
        return w, b

    w1, b1 = linear(ks[0], ks[1], state_dim, 128)
    w2, b2 = linear(ks[2], ks[3], 128, 64)
    wp, bp = linear(ks[4], ks[5], 64, num_actions)
    wv, bv = linear(ks[6], ks[7], 64, 1)
    return dict(w1=w1, b1=b1, w2=w2, b2=b2, wp=wp, bp=bp, wv=wv, bv=bv)


def _reference(state, p):
    h1 = jnp.maximum(state @ p["w1"] + p["b1"], 0.0)
    h2 = jnp.maximum(h1 @ p["w2"] + p["b2"], 0.0)
    return h2 @ p["wp"] + p["bp"], h2 @ p["wv"] + p["bv"]


if __name__ == "__main__":
    # TODO(synk): SentenceTransformer.encode / get_state_embedding have no
    # Pallas equivalent (external pretrained model + string I/O); the state
    # vector is treated as a plain float input instead.
    B, STATE_DIM, NUM_ACTIONS = 8, 32, 8

    key = jax.random.PRNGKey(0)
    k_x, k_p = jax.random.split(key)
    state = jax.random.normal(k_x, (B, STATE_DIM), jnp.float32)
    params = init_params(k_p, STATE_DIM, NUM_ACTIONS)

    policy_logits, value = policy_value_forward(state, params)
    jax.block_until_ready((policy_logits, value))

    ref_p, ref_v = _reference(state, params)
    assert policy_logits.shape == (B, NUM_ACTIONS)
    assert value.shape == (B, 1)
    # bf16 MXU datapath -> loosened tolerances vs. the f32 reference.
    assert jnp.allclose(policy_logits, ref_p, atol=5e-2, rtol=5e-2)
    assert jnp.allclose(value, ref_v, atol=5e-2, rtol=5e-2)

    # Exercise the multi-tile ("parallel" grid) path as well.
    B2 = 272
    state2 = jax.random.normal(jax.random.PRNGKey(1), (B2, STATE_DIM), jnp.float32)
    p2, v2 = policy_value_forward(state2, params)
    jax.block_until_ready((p2, v2))
    r2p, r2v = _reference(state2, params)
    assert jnp.allclose(p2, r2p, atol=5e-2, rtol=5e-2)
    assert jnp.allclose(v2, r2v, atol=5e-2, rtol=5e-2)

    print("KERNEL_OK")
</pallas_src>

<mosaic_0001>
module attributes {stable_mosaic.version = 11 : i64} {
  func.func @kernel(%arg0: i32, %arg1: memref<16x32xbf16, #tpu.memory_space<vmem>>, %arg2: memref<336x128xbf16, #tpu.memory_space<vmem>>, %arg3: memref<16x128xbf16, #tpu.memory_space<vmem>>) attributes {dimension_semantics = [#tpu.dimension_semantics<parallel>], iteration_bounds = array<i64: 1>, scalar_prefetch = 0 : i64, scratch_operands = 0 : i64, tpu.core_type = #tpu.core_type<tc>, window_params = [{transform_indices = @transform_0, window_bounds = array<i64: 16, 32>}, {pipeline_mode = #tpu.pipeline_mode<synchronous>, transform_indices = @transform_1, window_bounds = array<i64: 336, 128>}, {transform_indices = @transform_2, window_bounds = array<i64: 16, 128>}]} {
    %c0 = arith.constant 0 : index
    %c0_0 = arith.constant 0 : index
    %0 = vector.load %arg1[%c0, %c0_0] : memref<16x32xbf16, #tpu.memory_space<vmem>>, vector<16x32xbf16>
    %c0_1 = arith.constant 0 : index
    %c0_2 = arith.constant 0 : index
    %1 = vector.load %arg2[%c0_1, %c0_2] : memref<336x128xbf16, #tpu.memory_space<vmem>>, vector<32x128xbf16>
    %cst = arith.constant dense<0.000000e+00> : vector<16x128xf32>
    %2 = tpu.matmul %0, %1, %cst {dimension_numbers = #tpu.dot_dimension_numbers<[1], [0], [0], [1], [0, 0, 1, 1], [], []>} : vector<16x32xbf16>, vector<32x128xbf16>, vector<16x128xf32> -> vector<16x128xf32>
    %c32 = arith.constant 32 : index
    %c0_3 = arith.constant 0 : index
    %3 = vector.load %arg2[%c32, %c0_3] : memref<336x128xbf16, #tpu.memory_space<vmem>>, vector<1x128xbf16>
    %4 = arith.extf %3 : vector<1x128xbf16> to vector<1x128xf32>
    %5 = vector.broadcast %4 : vector<1x128xf32> to vector<16x128xf32>
    %6 = arith.addf %2, %5 : vector<16x128xf32>
    %cst_4 = arith.constant 0.000000e+00 : f32
    %7 = vector.broadcast %cst_4 : f32 to vector<16x128xf32>
    %8 = arith.maximumf %6, %7 : vector<16x128xf32>
    %9 = arith.truncf %8 : vector<16x128xf32> to vector<16x128xbf16>
    %c48 = arith.constant 48 : index
    %c0_5 = arith.constant 0 : index
    %10 = vector.load %arg2[%c48, %c0_5] : memref<336x128xbf16, #tpu.memory_space<vmem>>, vector<128x128xbf16>
    %cst_6 = arith.constant dense<0.000000e+00> : vector<16x128xf32>
    %11 = tpu.matmul %9, %10, %cst_6 {dimension_numbers = #tpu.dot_dimension_numbers<[1], [0], [0], [1], [0, 0, 1, 1], [], []>} : vector<16x128xbf16>, vector<128x128xbf16>, vector<16x128xf32> -> vector<16x128xf32>
    %c176 = arith.constant 176 : index
    %c0_7 = arith.constant 0 : index
    %12 = vector.load %arg2[%c176, %c0_7] : memref<336x128xbf16, #tpu.memory_space<vmem>>, vector<1x128xbf16>
    %13 = arith.extf %12 : vector<1x128xbf16> to vector<1x128xf32>
    %14 = vector.broadcast %13 : vector<1x128xf32> to vector<16x128xf32>
    %15 = arith.addf %11, %14 : vector<16x128xf32>
    %cst_8 = arith.constant 0.000000e+00 : f32
    %16 = vector.broadcast %cst_8 : f32 to vector<16x128xf32>
    %17 = arith.maximumf %15, %16 : vector<16x128xf32>
    %18 = arith.truncf %17 : vector<16x128xf32> to vector<16x128xbf16>
    %c192 = arith.constant 192 : index
    %c0_9 = arith.constant 0 : index
    %19 = vector.load %arg2[%c192, %c0_9] : memref<336x128xbf16, #tpu.memory_space<vmem>>, vector<128x128xbf16>
    %cst_10 = arith.constant dense<0.000000e+00> : vector<16x128xf32>
    %20 = tpu.matmul %18, %19, %cst_10 {dimension_numbers = #tpu.dot_dimension_numbers<[1], [0], [0], [1], [0, 0, 1, 1], [], []>} : vector<16x128xbf16>, vector<128x128xbf16>, vector<16x128xf32> -> vector<16x128xf32>
    %c320 = arith.constant 320 : index
    %c0_11 = arith.constant 0 : index
    %21 = vector.load %arg2[%c320, %c0_11] : memref<336x128xbf16, #tpu.memory_space<vmem>>, vector<1x128xbf16>
    %22 = arith.extf %21 : vector<1x128xbf16> to vector<1x128xf32>
    %23 = vector.broadcast %22 : vector<1x128xf32> to vector<16x128xf32>
    %24 = arith.addf %20, %23 : vector<16x128xf32>
    %25 = arith.truncf %24 : vector<16x128xf32> to vector<16x128xbf16>
    %c0_12 = arith.constant 0 : index
    %c0_13 = arith.constant 0 : index
    %26 = vector.load %arg3[%c0_12, %c0_13] : memref<16x128xbf16, #tpu.memory_space<vmem>>, vector<16x128xbf16>
    tpu.vector_store %arg3[%c0_12, %c0_13], %25 {strides = array<i32>} : memref<16x128xbf16, #tpu.memory_space<vmem>>, vector<16x128xbf16>,
    return
  }
  func.func @transform_0(%arg0: i32) -> (i32, i32) {
    %c0_i32 = arith.constant 0 : i32
    %c0_i32_0 = arith.constant 0 : i32
    return %arg0, %c0_i32 : i32, i32
  }
  func.func @transform_1(%arg0: i32) -> (i32, i32) {
    %c0_i32 = arith.constant 0 : i32
    %c0_i32_0 = arith.constant 0 : i32
    %c0_i32_1 = arith.constant 0 : i32
    return %c0_i32, %c0_i32_0 : i32, i32
  }
  func.func @transform_2(%arg0: i32) -> (i32, i32) {
    %c0_i32 = arith.constant 0 : i32
    %c0_i32_0 = arith.constant 0 : i32
    return %arg0, %c0_i32 : i32, i32
  }
}

module attributes {stable_mosaic.version = 11 : i64} {
  func.func @kernel(%arg0: i32, %arg1: memref<16x32xbf16, #tpu.memory_space<vmem>>, %arg2: memref<336x128xbf16, #tpu.memory_space<vmem>>, %arg3: memref<16x128xbf16, #tpu.memory_space<vmem>>) attributes {dimension_semantics = [#tpu.dimension_semantics<parallel>], iteration_bounds = array<i64: 1>, scalar_prefetch = 0 : i64, scratch_operands = 0 : i64, tpu.core_type = #tpu.core_type<tc>, window_params = [{transform_indices = @transform_0, window_bounds = array<i64: 16, 32>}, {pipeline_mode = #tpu.pipeline_mode<synchronous>, transform_indices = @transform_1, window_bounds = array<i64: 336, 128>}, {transform_indices = @transform_2, window_bounds = array<i64: 16, 128>}]} {
    %c0 = arith.constant 0 : index
    %c0_0 = arith.constant 0 : index
    %0 = vector.load %arg1[%c0, %c0_0] : memref<16x32xbf16, #tpu.memory_space<vmem>>, vector<16x32xbf16>
    %c0_1 = arith.constant 0 : index
    %c0_2 = arith.constant 0 : index
    %1 = vector.load %arg2[%c0_1, %c0_2] : memref<336x128xbf16, #tpu.memory_space<vmem>>, vector<32x128xbf16>
    %cst = arith.constant dense<0.000000e+00> : vector<16x128xf32>
    %2 = tpu.matmul %0, %1, %cst {dimension_numbers = #tpu.dot_dimension_numbers<[1], [0], [0], [1], [0, 0, 1, 1], [], []>} : vector<16x32xbf16>, vector<32x128xbf16>, vector<16x128xf32> -> vector<16x128xf32>
    %c32 = arith.constant 32 : index
    %c0_3 = arith.constant 0 : index
    %3 = vector.load %arg2[%c32, %c0_3] : memref<336x128xbf16, #tpu.memory_space<vmem>>, vector<1x128xbf16>
    %4 = arith.extf %3 : vector<1x128xbf16> to vector<1x128xf32>
    %5 = vector.broadcast %4 : vector<1x128xf32> to vector<16x128xf32>
    %6 = arith.addf %2, %5 : vector<16x128xf32>
    %cst_4 = arith.constant 0.000000e+00 : f32
    %7 = vector.broadcast %cst_4 : f32 to vector<16x128xf32>
    %8 = arith.maximumf %6, %7 : vector<16x128xf32>
    %9 = arith.truncf %8 : vector<16x128xf32> to vector<16x128xbf16>
    %c48 = arith.constant 48 : index
    %c0_5 = arith.constant 0 : index
    %10 = vector.load %arg2[%c48, %c0_5] : memref<336x128xbf16, #tpu.memory_space<vmem>>, vector<128x128xbf16>
    %cst_6 = arith.constant dense<0.000000e+00> : vector<16x128xf32>
    %11 = tpu.matmul %9, %10, %cst_6 {dimension_numbers = #tpu.dot_dimension_numbers<[1], [0], [0], [1], [0, 0, 1, 1], [], []>} : vector<16x128xbf16>, vector<128x128xbf16>, vector<16x128xf32> -> vector<16x128xf32>
    %c176 = arith.constant 176 : index
    %c0_7 = arith.constant 0 : index
    %12 = vector.load %arg2[%c176, %c0_7] : memref<336x128xbf16, #tpu.memory_space<vmem>>, vector<1x128xbf16>
    %13 = arith.extf %12 : vector<1x128xbf16> to vector<1x128xf32>
    %14 = vector.broadcast %13 : vector<1x128xf32> to vector<16x128xf32>
    %15 = arith.addf %11, %14 : vector<16x128xf32>
    %cst_8 = arith.constant 0.000000e+00 : f32
    %16 = vector.broadcast %cst_8 : f32 to vector<16x128xf32>
    %17 = arith.maximumf %15, %16 : vector<16x128xf32>
    %18 = arith.truncf %17 : vector<16x128xf32> to vector<16x128xbf16>
    %c192 = arith.constant 192 : index
    %c0_9 = arith.constant 0 : index
    %19 = vector.load %arg2[%c192, %c0_9] : memref<336x128xbf16, #tpu.memory_space<vmem>>, vector<128x128xbf16>
    %cst_10 = arith.constant dense<0.000000e+00> : vector<16x128xf32>
    %20 = tpu.matmul %18, %19, %cst_10 {dimension_numbers = #tpu.dot_dimension_numbers<[1], [0], [0], [1], [0, 0, 1, 1], [], []>} : vector<16x128xbf16>, vector<128x128xbf16>, vector<16x128xf32> -> vector<16x128xf32>
    %c320 = arith.constant 320 : index
    %c0_11 = arith.constant 0 : index
    %21 = vector.load %arg2[%c320, %c0_11] : memref<336x128xbf16, #tpu.memory_space<vmem>>, vector<1x128xbf16>
    %22 = arith.extf %21 : vector<1x128xbf16> to vector<1x128xf32>
    %23 = vector.broadcast %22 : vector<1x128xf32> to vector<16x128xf32>
    %24 = arith.addf %20, %23 : vector<16x128xf32>
    %25 = arith.truncf %24 : vector<16x128xf32> to vector<16x128xbf16>
    %c0_12 = arith.constant 0 : index
    %c0_13 = arith.constant 0 : index
    %26 = vector.load %arg3[%c0_12, %c0_13] : memref<16x128xbf16, #tpu.memory_space<vmem>>, vector<16x128xbf16>
    tpu.vector_store %arg3[%c0_12, %c0_13], %25 {strides = array<i32>} : memref<16x128xbf16, #tpu.memory_space<vmem>>, vector<16x128xbf16>,
    return
  }
  func.func @transform_0(%arg0: i32) -> (i32, i32) {
    %c0_i32 = arith.constant 0 : i32
    %c0_i32_0 = arith.constant 0 : i32
    return %arg0, %c0_i32 : i32, i32
  }
  func.func @transform_1(%arg0: i32) -> (i32, i32) {
    %c0_i32 = arith.constant 0 : i32
    %c0_i32_0 = arith.constant 0 : i32
    %c0_i32_1 = arith.constant 0 : i32
    return %c0_i32, %c0_i32_0 : i32, i32
  }
  func.func @transform_2(%arg0: i32) -> (i32, i32) {
    %c0_i32 = arith.constant 0 : i32
    %c0_i32_0 = arith.constant 0 : i32
    return %arg0, %c0_i32 : i32, i32
  }
}

</mosaic_0001>

<bundles_post_ra>
// kernel: tpu_custom_call.1
= control target key start
LH: loop header
LB: loop body
LE: loop exit
PB: predicated region body
PF: predicated region fallthrough
CT: control target
= control target key end

     0   :  { %7 = vsyncpa [#allocation3], 0  ;;  %s658_s0 = inlined_call_operand.hbm [shape: bf16[16,32], index: 0, kind: input, shape index: {}]   ;;  %s659_s1 = inlined_call_operand.hbm [shape: bf16[336,128], index: 1, kind: input, shape index: {}]   ;;  %s660_s2 = inlined_call_operand.hbm [shape: bf16[16,128], index: 2, kind: output, shape index: {}]  }
   0x1   :  { %8 = vsyncpa [#allocation6], 0 }
   0x2   :  { %9 = vsyncpa [#allocation4], 0  ;;  %s567_s9 = smov [#allocation2]   ;;  %s495_s13 = scalar_lea.hbm %s658_s0, 128 }
   0x3   :  { %s15_s10 = sshll.u32 %s567_s9, 4  ;;  %p496_p0 = scmp.ne.s32.totalorder %s658_s0, %s495_s13  ;;  %s16_s10 = int_to_ptr.vmem [resolvable:$true] %s15_s10 }
   0x4   :  { %p499_p1 = scmp.lt.u32.totalorder %s495_s13, %s658_s0 }
   0x6   :  { %p501_p2 = pnand %p499_p1, %p496_p0 }
   0x8   :  { %504 = shalt.err (!%p501_p2)
}
   0x9   :  { %s505_s18 = scalar_lea.vmem %s16_s10, 128  ;;  %p510_p4 = scmp.lt.s32.totalorder %s16_s10, %s16_s10 }
   0xa   :  { %p506_p3 = scmp.ne.s32.totalorder %s16_s10, %s505_s18  ;;  %p511_p5 = scmp.lt.s32.totalorder %s505_s18, %s505_s18 }
   0xc   :  { %p512_p6 = por %p511_p5, %p510_p4 }
   0xe   :  { %p513_p7 = pnand %p512_p6, %p506_p3 }
  0x10   :  { %516 = shalt.err (!%p513_p7)
}
  0x11   :  { %s568_s19 = smov 64   ;;  %s569_s20 = smov 4  }
  0x12   :  { %21 = dma.hbm_to_vmem [thread:$0]  %s658_s0, 128, %s16_s10, [#allocation3], %s568_s19, %s568_s19, %s569_s20  }
  0x13   :  { %s570_s23 = smov [#allocation5]   ;;  %s517_s27 = scalar_lea.hbm %s659_s1, 2688 }
  0x14   :  { %s27_s24 = sshll.u32 %s570_s23, 4  ;;  %p518_p8 = scmp.ne.s32.totalorder %s659_s1, %s517_s27  ;;  %s28_s24 = int_to_ptr.vmem [resolvable:$true] %s27_s24 }
  0x15   :  { %p521_p9 = scmp.lt.u32.totalorder %s517_s27, %s659_s1 }
  0x17   :  { %p523_p10 = pnand %p521_p9, %p518_p8 }
  0x19   :  { %526 = shalt.err (!%p523_p10)
}
  0x1a   :  { %s527_s4 = scalar_lea.vmem %s28_s24, 2688  ;;  %p532_p12 = scmp.lt.s32.totalorder %s28_s24, %s28_s24 }
  0x1b   :  { %p528_p11 = scmp.ne.s32.totalorder %s28_s24, %s527_s4  ;;  %p533_p13 = scmp.lt.s32.totalorder %s527_s4, %s527_s4 }
  0x1d   :  { %p534_p0 = por %p533_p13, %p532_p12 }
  0x1f   :  { %p535_p1 = pnand %p534_p0, %p528_p11 }
  0x21   :  { %538 = shalt.err (!%p535_p1)
}
  0x22   :  { %33 = dma.hbm_to_vmem [thread:$0]  %s659_s1, 2688, %s28_s24, [#allocation6], %s568_s19, %s568_s19, %s569_s20  }
  0x23   :  { %561 = dma.done.wait [#allocation3], 128  }
  0x24   :  { %562 = vsyncadd [#allocation3], 4294967168 }
  0x25   :  { %563 = dma.done.wait [#allocation6], 2688  }
  0x26   :  { %564 = vsyncadd [#allocation6], 4294964608  ;;  %v571_v0 = vmov 0.0   ;;  %vm572_vm0 = vmmov 0   ;;  %v476_v1 = vld [vmem:[#allocation5] sm:$0xff]   ;;  %v477_v2 = vld [vmem:[#allocation5 + $0x8] sm:$0xff]   ;;  %v49_v18 = vlaneseq }
  0x27   :  { %421 = vmatprep.subr.bf16.mxu0 %v571_v0  ;;  %425 = vmatprep.mubr.msk.bf16.mxu0 %vm572_vm0, %v571_v0  ;;  %v479_v3 = vld [vmem:[#allocation5 + $0x18] sm:$0xff]   ;;  %v480_v5 = vld [vmem:[#allocation5 + $0x20] sm:$0xff]   ;;  %vm70_vm1 = vcmask 261120   ;;  %v481_v6 = vld [vmem:[#allocation5 + $0x28] sm:$0xff]   ;;  %s573_s1 = smov [#allocation7]  }
  0x28   :  { %429 = vmatprep.subr.bf16.mxu1 %v571_v0  ;;  %445 = vmatprep.mubr.msk.bf16.mxu1 %vm572_vm0, %v571_v0  ;;  %v478_v4 = vld [vmem:[#allocation2] sm:$0xff]   ;;  %v482_v7 = vld [vmem:[#allocation5 + $0x30] sm:$0xff]   ;;  %v484_v9 = vld [vmem:[#allocation5 + $0x40] sm:$0xff]   ;;  %v50_v19 = vshrl.u32 %v49_v18, 7  ;;  %s358_s6 = sshll.u32 %s573_s1, 4  ;;  %s359_s6 = int_to_ptr.vmem [resolvable:$true] %s358_s6 }
  0x29   :  { %422 = vmatpush3.bf16.msra.mxu0 %v476_v1  ;;  %430 = vmatpush3.bf16.msra.mxu1 %v479_v3  ;;  %v483_v8 = vld [vmem:[#allocation5 + $0x38] sm:$0xff]   ;;  %v485_v10 = vld [vmem:[#allocation5 + $0x48] sm:$0xff]   ;;  %v486_v11 = vld [vmem:[#allocation5 + $0x50] sm:$0xff]   ;;  %s539_s7 = scalar_lea.vmem %s359_s6, 128  ;;  %p544_p3 = scmp.lt.s32.totalorder %s359_s6, %s359_s6 }
  0x2a   :  { %423 = vmatprep.subr.bf16.mxu0 %v571_v0  ;;  %431 = vmatprep.subr.bf16.mxu1 %v571_v0  ;;  %v487_v12 = vld [vmem:[#allocation5 + $0x60] sm:$0xff]   ;;  %v488_v13 = vld [vmem:[#allocation5 + $0x68] sm:$0xff]   ;;  %v489_v14 = vld [vmem:[#allocation5 + $0x70] sm:$0xff]   ;;  %v51_v22 = vsub.s32 0, %v50_v19  ;;  %p540_p2 = scmp.ne.s32.totalorder %s359_s6, %s539_s7  ;;  %p545_p4 = scmp.lt.s32.totalorder %s539_s7, %s539_s7 }
  0x2b   :  { %v490_v15 = vld [vmem:[#allocation5 + $0x78] sm:$0xff]   ;;  %v491_v16 = vld [vmem:[#allocation5 + $0x80] sm:$0xff]   ;;  %v492_v17 = vld [vmem:[#allocation5 + $0x88] sm:$0xff]  }
  0x2c   :  { %v47_v20 = vld [vmem:[#allocation5 + $0x10] sm:$0x1]  ;;  %v494_v34 = vld [vmem:[#allocation5 + $0x98] sm:$0xff]   ;;  %v248_v47 = vld [vmem:[#allocation5 + $0xa0] sm:$0x1]  ;;  %p546_p5 = por %p545_p4, %p544_p3 }
  0x2d   :  { %424 = vmatpush3.bf16.msra.mxu0 %v477_v2  ;;  %432 = vmatpush3.bf16.msra.mxu1 %v480_v5  ;;  %v48_v21 = vunpack.c.l.bf16 %v47_v20  ;;  %v493_v33 = vld [vmem:[#allocation5 + $0x90] sm:$0xff]   ;;  %v134_v35 = vld [vmem:[#allocation5 + $0x58] sm:$0x1]  ;;  %v249_v48 = vunpack.c.l.bf16 %v248_v47 }
  0x2e   :  { %449 = vmatprep.subr.bf16.mxu0 %v571_v0  ;;  %433 = vmatprep.subr.bf16.mxu1 %v571_v0  ;;  %v135_v36 = vunpack.c.l.bf16 %v134_v35  ;;  %p547_p6 = pnand %p546_p5, %p540_p2 }
  0x2f   :  { %v52_v23 = vrot.slane %v48_v21, %v51_v22  ;;  %v253_v49 = vrot.slane %v249_v48, %v51_v22 }
  0x30   :  { %426 = vmatmul.mubr.msk.bf16.vlgmr.msra.gmra.mrb[0].mxu0 %vm70_vm1, %v478_v4  ;;  %v139_v37 = vrot.slane %v135_v36, %v51_v22 }
  0x31   :  { %465 = vmatprep.mubr.msk.bf16.mxu0 %vm572_vm0, %v571_v0  ;;  %434 = vmatpush3.bf16.msra.mxu1 %v481_v6 }
  0x32   :  { %435 = vmatprep.subr.bf16.mxu1 %v571_v0  ;;  %450 = vmatpush3.bf16.msra.mxu0 %v487_v12 }
  0x33   :  { %451 = vmatprep.subr.bf16.mxu0 %v571_v0 }
  0x35   :  { %436 = vmatpush3.bf16.msra.mxu1 %v482_v7 }
  0x36   :  { %437 = vmatprep.subr.bf16.mxu1 %v571_v0  ;;  %452 = vmatpush3.bf16.msra.mxu0 %v488_v13 }
  0x37   :  { %453 = vmatprep.subr.bf16.mxu0 %v571_v0 }
  0x39   :  { %438 = vmatpush3.bf16.msra.mxu1 %v483_v8 }
  0x3a   :  { %439 = vmatprep.subr.bf16.mxu1 %v571_v0  ;;  %454 = vmatpush3.bf16.msra.mxu0 %v489_v14 }
  0x3b   :  { %455 = vmatprep.subr.bf16.mxu0 %v571_v0 }
  0x3d   :  { %440 = vmatpush3.bf16.msra.mxu1 %v484_v9 }
  0x3e   :  { %441 = vmatprep.subr.bf16.mxu1 %v571_v0  ;;  %456 = vmatpush3.bf16.msra.mxu0 %v490_v15 }
  0x3f   :  { %457 = vmatprep.subr.bf16.mxu0 %v571_v0 }
  0x41   :  { %442 = vmatpush3.bf16.msra.mxu1 %v485_v10 }
  0x42   :  { %443 = vmatprep.subr.bf16.mxu1 %v571_v0  ;;  %458 = vmatpush3.bf16.msra.mxu0 %v491_v16 }
  0x43   :  { %459 = vmatprep.subr.bf16.mxu0 %v571_v0 }
  0x45   :  { %444 = vmatpush3.bf16.msra.mxu1 %v486_v11 }
  0x46   :  { %460 = vmatpush3.bf16.msra.mxu0 %v492_v17 }
  0x47   :  { %461 = vmatprep.subr.bf16.mxu0 %v571_v0 }
  0x4a   :  { %462 = vmatpush3.bf16.msra.mxu0 %v493_v33 }
  0x4b   :  { %463 = vmatprep.subr.bf16.mxu0 %v571_v0 }
  0x4e   :  { %464 = vmatpush3.bf16.msra.mxu0 %v494_v34 }
 0x103   :  { %v108_v24 = vpop.f32.mrb[0].mxu0 }
 0x104   :  { %v109_v25 = vadd.f32 %v108_v24, %v52_v23  ;;  %v427_v26 = vpop.f32.mrb[1].mxu0 }
 0x105   :  { %v111_v27 = vpop.f32.mrb[2].mxu0 }
 0x106   :  { %v112_v28 = vadd.f32 %v111_v27, %v52_v23  ;;  %v428_v29 = vpop.f32.mrb[3].mxu0  ;;  %v115_v30 = vmax.f32 %v109_v25, 0.0 }
 0x108   :  { %v116_v31 = vmax.f32 %v112_v28, 0.0 }
 0x10a   :  { %v117_v32 = vpack.c.bf16 %v116_v31, %v115_v30 }
 0x10c   :  { %446 = vmatmul.mubr.bf16.vlgmr.msra.gmra.mrb[0].mxu1 %v117_v32 }
 0x1df   :  { %v222_v38 = vpop.f32.mrb[0].mxu1 }
 0x1e0   :  { %v223_v39 = vadd.f32 %v222_v38, %v139_v37  ;;  %v447_v40 = vpop.f32.mrb[1].mxu1 }
 0x1e1   :  { %v225_v41 = vpop.f32.mrb[2].mxu1 }
 0x1e2   :  { %v226_v42 = vadd.f32 %v225_v41, %v139_v37  ;;  %v448_v43 = vpop.f32.mrb[3].mxu1  ;;  %v229_v44 = vmax.f32 %v223_v39, 0.0 }
 0x1e4   :  { %v230_v45 = vmax.f32 %v226_v42, 0.0 }
 0x1e6   :  { %v231_v46 = vpack.c.bf16 %v230_v45, %v229_v44 }
 0x1e8   :  { %466 = vmatmul.mubr.bf16.vlgmr.msra.gmra.mrb[4].mxu0 %v231_v46 }
 0x2bb   :  { %v336_v50 = vpop.f32.mrb[4].mxu0 }
 0x2bc   :  { %v467_v51 = vpop.f32.mrb[5].mxu0  ;;  %v337_v53 = vadd.f32 %v336_v50, %v253_v49 }
 0x2bd   :  { %v339_v52 = vpop.f32.mrb[6].mxu0 }
 0x2be   :  { %v340_v54 = vadd.f32 %v339_v52, %v253_v49  ;;  %v468_v55 = vpop.f32.mrb[7].mxu0 }
 0x2c0   :  { %v398_v56 = vpack.c.bf16 %v340_v54, %v337_v53 }
 0x2c2   :  { %399 = vst [vmem:[#allocation7] sm:$0xff] %v398_v56  }
 0x2c3   :  { %550 = shalt.err (!%p547_p6)
}
 0x2c4   :  { %s551_s10 = scalar_lea.hbm %s660_s2, 128 }
 0x2c5   :  { %p552_p7 = scmp.ne.s32.totalorder %s660_s2, %s551_s10  ;;  %p555_p8 = scmp.lt.u32.totalorder %s551_s10, %s660_s2 }
 0x2c7   :  { %p557_p9 = pnand %p555_p8, %p552_p7 }
 0x2c9   :  { %560 = shalt.err (!%p557_p9)
}
 0x2ca   :  { %364 = dma.vmem_to_hbm [thread:$0]  %s359_s6, 128, %s660_s2, [#allocation4], %s568_s19, %s568_s19, %s569_s20  }
 0x2cb   :  { %565 = dma.done.wait [#allocation4], 128  }
 0x2cc   :  { %566 = vsyncadd [#allocation4], 4294967168 }
 0x2cd   :  { %368 = vsyncpa [#allocation3], 1 }
 0x2ce   :  { %369 = vsyncpa [#allocation6], 1 }
 0x2cf   :  { %370 = vsyncpa [#allocation4], 1 }

// kernel: tpu_custom_call.1
= control target key start
LH: loop header
LB: loop body
LE: loop exit
PB: predicated region body
PF: predicated region fallthrough
CT: control target
= control target key end

     0   :  { %7 = vsyncpa [#allocation3], 0  ;;  %s658_s0 = inlined_call_operand.hbm [shape: bf16[16,32], index: 0, kind: input, shape index: {}]   ;;  %s659_s1 = inlined_call_operand.hbm [shape: bf16[336,128], index: 1, kind: input, shape index: {}]   ;;  %s660_s2 = inlined_call_operand.hbm [shape: bf16[16,128], index: 2, kind: output, shape index: {}]  }
   0x1   :  { %8 = vsyncpa [#allocation6], 0 }
   0x2   :  { %9 = vsyncpa [#allocation4], 0  ;;  %s567_s9 = smov [#allocation2]   ;;  %s495_s13 = scalar_lea.hbm %s658_s0, 128 }
   0x3   :  { %s15_s10 = sshll.u32 %s567_s9, 4  ;;  %p496_p0 = scmp.ne.s32.totalorder %s658_s0, %s495_s13  ;;  %s16_s10 = int_to_ptr.vmem [resolvable:$true] %s15_s10 }
   0x4   :  { %p499_p1 = scmp.lt.u32.totalorder %s495_s13, %s658_s0 }
   0x6   :  { %p501_p2 = pnand %p499_p1, %p496_p0 }
   0x8   :  { %504 = shalt.err (!%p501_p2)
}
   0x9   :  { %s505_s18 = scalar_lea.vmem %s16_s10, 128  ;;  %p510_p4 = scmp.lt.s32.totalorder %s16_s10, %s16_s10 }
   0xa   :  { %p506_p3 = scmp.ne.s32.totalorder %s16_s10, %s505_s18  ;;  %p511_p5 = scmp.lt.s32.totalorder %s505_s18, %s505_s18 }
   0xc   :  { %p512_p6 = por %p511_p5, %p510_p4 }
   0xe   :  { %p513_p7 = pnand %p512_p6, %p506_p3 }
  0x10   :  { %516 = shalt.err (!%p513_p7)
}
  0x11   :  { %s568_s19 = smov 64   ;;  %s569_s20 = smov 4  }
  0x12   :  { %21 = dma.hbm_to_vmem [thread:$0]  %s658_s0, 128, %s16_s10, [#allocation3], %s568_s19, %s568_s19, %s569_s20  }
  0x13   :  { %s570_s23 = smov [#allocation5]   ;;  %s517_s27 = scalar_lea.hbm %s659_s1, 2688 }
  0x14   :  { %s27_s24 = sshll.u32 %s570_s23, 4  ;;  %p518_p8 = scmp.ne.s32.totalorder %s659_s1, %s517_s27  ;;  %s28_s24 = int_to_ptr.vmem [resolvable:$true] %s27_s24 }
  0x15   :  { %p521_p9 = scmp.lt.u32.totalorder %s517_s27, %s659_s1 }
  0x17   :  { %p523_p10 = pnand %p521_p9, %p518_p8 }
  0x19   :  { %526 = shalt.err (!%p523_p10)
}
  0x1a   :  { %s527_s4 = scalar_lea.vmem %s28_s24, 2688  ;;  %p532_p12 = scmp.lt.s32.totalorder %s28_s24, %s28_s24 }
  0x1b   :  { %p528_p11 = scmp.ne.s32.totalorder %s28_s24, %s527_s4  ;;  %p533_p13 = scmp.lt.s32.totalorder %s527_s4, %s527_s4 }
  0x1d   :  { %p534_p0 = por %p533_p13, %p532_p12 }
  0x1f   :  { %p535_p1 = pnand %p534_p0, %p528_p11 }
  0x21   :  { %538 = shalt.err (!%p535_p1)
}
  0x22   :  { %33 = dma.hbm_to_vmem [thread:$0]  %s659_s1, 2688, %s28_s24, [#allocation6], %s568_s19, %s568_s19, %s569_s20  }
  0x23   :  { %561 = dma.done.wait [#allocation3], 128  }
  0x24   :  { %562 = vsyncadd [#allocation3], 4294967168 }
  0x25   :  { %563 = dma.done.wait [#allocation6], 2688  }
  0x26   :  { %564 = vsyncadd [#allocation6], 4294964608  ;;  %v571_v0 = vmov 0.0   ;;  %vm572_vm0 = vmmov 0   ;;  %v476_v1 = vld [vmem:[#allocation5] sm:$0xff]   ;;  %v477_v2 = vld [vmem:[#allocation5 + $0x8] sm:$0xff]   ;;  %v49_v18 = vlaneseq }
  0x27   :  { %421 = vmatprep.subr.bf16.mxu0 %v571_v0  ;;  %425 = vmatprep.mubr.msk.bf16.mxu0 %vm572_vm0, %v571_v0  ;;  %v479_v3 = vld [vmem:[#allocation5 + $0x18] sm:$0xff]   ;;  %v480_v5 = vld [vmem:[#allocation5 + $0x20] sm:$0xff]   ;;  %vm70_vm1 = vcmask 261120   ;;  %v481_v6 = vld [vmem:[#allocation5 + $0x28] sm:$0xff]   ;;  %s573_s1 = smov [#allocation7]  }
  0x28   :  { %429 = vmatprep.subr.bf16.mxu1 %v571_v0  ;;  %445 = vmatprep.mubr.msk.bf16.mxu1 %vm572_vm0, %v571_v0  ;;  %v478_v4 = vld [vmem:[#allocation2] sm:$0xff]   ;;  %v482_v7 = vld [vmem:[#allocation5 + $0x30] sm:$0xff]   ;;  %v484_v9 = vld [vmem:[#allocation5 + $0x40] sm:$0xff]   ;;  %v50_v19 = vshrl.u32 %v49_v18, 7  ;;  %s358_s6 = sshll.u32 %s573_s1, 4  ;;  %s359_s6 = int_to_ptr.vmem [resolvable:$true] %s358_s6 }
  0x29   :  { %422 = vmatpush3.bf16.msra.mxu0 %v476_v1  ;;  %430 = vmatpush3.bf16.msra.mxu1 %v479_v3  ;;  %v483_v8 = vld [vmem:[#allocation5 + $0x38] sm:$0xff]   ;;  %v485_v10 = vld [vmem:[#allocation5 + $0x48] sm:$0xff]   ;;  %v486_v11 = vld [vmem:[#allocation5 + $0x50] sm:$0xff]   ;;  %s539_s7 = scalar_lea.vmem %s359_s6, 128  ;;  %p544_p3 = scmp.lt.s32.totalorder %s359_s6, %s359_s6 }
  0x2a   :  { %423 = vmatprep.subr.bf16.mxu0 %v571_v0  ;;  %431 = vmatprep.subr.bf16.mxu1 %v571_v0  ;;  %v487_v12 = vld [vmem:[#allocation5 + $0x60] sm:$0xff]   ;;  %v488_v13 = vld [vmem:[#allocation5 + $0x68] sm:$0xff]   ;;  %v489_v14 = vld [vmem:[#allocation5 + $0x70] sm:$0xff]   ;;  %v51_v22 = vsub.s32 0, %v50_v19  ;;  %p540_p2 = scmp.ne.s32.totalorder %s359_s6, %s539_s7  ;;  %p545_p4 = scmp.lt.s32.totalorder %s539_s7, %s539_s7 }
  0x2b   :  { %v490_v15 = vld [vmem:[#allocation5 + $0x78] sm:$0xff]   ;;  %v491_v16 = vld [vmem:[#allocation5 + $0x80] sm:$0xff]   ;;  %v492_v17 = vld [vmem:[#allocation5 + $0x88] sm:$0xff]  }
  0x2c   :  { %v47_v20 = vld [vmem:[#allocation5 + $0x10] sm:$0x1]  ;;  %v494_v34 = vld [vmem:[#allocation5 + $0x98] sm:$0xff]   ;;  %v248_v47 = vld [vmem:[#allocation5 + $0xa0] sm:$0x1]  ;;  %p546_p5 = por %p545_p4, %p544_p3 }
  0x2d   :  { %424 = vmatpush3.bf16.msra.mxu0 %v477_v2  ;;  %432 = vmatpush3.bf16.msra.mxu1 %v480_v5  ;;  %v48_v21 = vunpack.c.l.bf16 %v47_v20  ;;  %v493_v33 = vld [vmem:[#allocation5 + $0x90] sm:$0xff]   ;;  %v134_v35 = vld [vmem:[#allocation5 + $0x58] sm:$0x1]  ;;  %v249_v48 = vunpack.c.l.bf16 %v248_v47 }
  0x2e   :  { %449 = vmatprep.subr.bf16.mxu0 %v571_v0  ;;  %433 = vmatprep.subr.bf16.mxu1 %v571_v0  ;;  %v135_v36 = vunpack.c.l.bf16 %v134_v35  ;;  %p547_p6 = pnand %p546_p5, %p540_p2 }
  0x2f   :  { %v52_v23 = vrot.slane %v48_v21, %v51_v22  ;;  %v253_v49 = vrot.slane %v249_v48, %v51_v22 }
  0x30   :  { %426 = vmatmul.mubr.msk.bf16.vlgmr.msra.gmra.mrb[0].mxu0 %vm70_vm1, %v478_v4  ;;  %v139_v37 = vrot.slane %v135_v36, %v51_v22 }
  0x31   :  { %465 = vmatprep.mubr.msk.bf16.mxu0 %vm572_vm0, %v571_v0  ;;  %434 = vmatpush3.bf16.msra.mxu1 %v481_v6 }
  0x32   :  { %435 = vmatprep.subr.bf16.mxu1 %v571_v0  ;;  %450 = vmatpush3.bf16.msra.mxu0 %v487_v12 }
  0x33   :  { %451 = vmatprep.subr.bf16.mxu0 %v571_v0 }
  0x35   :  { %436 = vmatpush3.bf16.msra.mxu1 %v482_v7 }
  0x36   :  { %437 = vmatprep.subr.bf16.mxu1 %v571_v0  ;;  %452 = vmatpush3.bf16.msra.mxu0 %v488_v13 }
  0x37   :  { %453 = vmatprep.subr.bf16.mxu0 %v571_v0 }
  0x39   :  { %438 = vmatpush3.bf16.msra.mxu1 %v483_v8 }
  0x3a   :  { %439 = vmatprep.subr.bf16.mxu1 %v571_v0  ;;  %454 = vmatpush3.bf16.msra.mxu0 %v489_v14 }
  0x3b   :  { %455 = vmatprep.subr.bf16.mxu0 %v571_v0 }
  0x3d   :  { %440 = vmatpush3.bf16.msra.mxu1 %v484_v9 }
  0x3e   :  { %441 = vmatprep.subr.bf16.mxu1 %v571_v0  ;;  %456 = vmatpush3.bf16.msra.mxu0 %v490_v15 }
  0x3f   :  { %457 = vmatprep.subr.bf16.mxu0 %v571_v0 }
  0x41   :  { %442 = vmatpush3.bf16.msra.mxu1 %v485_v10 }
  0x42   :  { %443 = vmatprep.subr.bf16.mxu1 %v571_v0  ;;  %458 = vmatpush3.bf16.msra.mxu0 %v491_v16 }
  0x43   :  { %459 = vmatprep.subr.bf16.mxu0 %v571_v0 }
  0x45   :  { %444 = vmatpush3.bf16.msra.mxu1 %v486_v11 }
  0x46   :  { %460 = vmatpush3.bf16.msra.mxu0 %v492_v17 }
  0x47   :  { %461 = vmatprep.subr.bf16.mxu0 %v571_v0 }
  0x4a   :  { %462 = vmatpush3.bf16.msra.mxu0 %v493_v33 }
  0x4b   :  { %463 = vmatprep.subr.bf16.mxu0 %v571_v0 }
  0x4e   :  { %464 = vmatpush3.bf16.msra.mxu0 %v494_v34 }
 0x103   :  { %v108_v24 = vpop.f32.mrb[0].mxu0 }
 0x104   :  { %v109_v25 = vadd.f32 %v108_v24, %v52_v23  ;;  %v427_v26 = vpop.f32.mrb[1].mxu0 }
 0x105   :  { %v111_v27 = vpop.f32.mrb[2].mxu0 }
 0x106   :  { %v112_v28 = vadd.f32 %v111_v27, %v52_v23  ;;  %v428_v29 = vpop.f32.mrb[3].mxu0  ;;  %v115_v30 = vmax.f32 %v109_v25, 0.0 }
 0x108   :  { %v116_v31 = vmax.f32 %v112_v28, 0.0 }
 0x10a   :  { %v117_v32 = vpack.c.bf16 %v116_v31, %v115_v30 }
 0x10c   :  { %446 = vmatmul.mubr.bf16.vlgmr.msra.gmra.mrb[0].mxu1 %v117_v32 }
 0x1df   :  { %v222_v38 = vpop.f32.mrb[0].mxu1 }
 0x1e0   :  { %v223_v39 = vadd.f32 %v222_v38, %v139_v37  ;;  %v447_v40 = vpop.f32.mrb[1].mxu1 }
 0x1e1   :  { %v225_v41 = vpop.f32.mrb[2].mxu1 }
 0x1e2   :  { %v226_v42 = vadd.f32 %v225_v41, %v139_v37  ;;  %v448_v43 = vpop.f32.mrb[3].mxu1  ;;  %v229_v44 = vmax.f32 %v223_v39, 0.0 }
 0x1e4   :  { %v230_v45 = vmax.f32 %v226_v42, 0.0 }
 0x1e6   :  { %v231_v46 = vpack.c.bf16 %v230_v45, %v229_v44 }
 0x1e8   :  { %466 = vmatmul.mubr.bf16.vlgmr.msra.gmra.mrb[4].mxu0 %v231_v46 }
 0x2bb   :  { %v336_v50 = vpop.f32.mrb[4].mxu0 }
 0x2bc   :  { %v467_v51 = vpop.f32.mrb[5].mxu0  ;;  %v337_v53 = vadd.f32 %v336_v50, %v253_v49 }
 0x2bd   :  { %v339_v52 = vpop.f32.mrb[6].mxu0 }
 0x2be   :  { %v340_v54 = vadd.f32 %v339_v52, %v253_v49  ;;  %v468_v55 = vpop.f32.mrb[7].mxu0 }
 0x2c0   :  { %v398_v56 = vpack.c.bf16 %v340_v54, %v337_v53 }
 0x2c2   :  { %399 = vst [vmem:[#allocation7] sm:$0xff] %v398_v56  }
 0x2c3   :  { %550 = shalt.err (!%p547_p6)
}
 0x2c4   :  { %s551_s10 = scalar_lea.hbm %s660_s2, 128 }
 0x2c5   :  { %p552_p7 = scmp.ne.s32.totalorder %s660_s2, %s551_s10  ;;  %p555_p8 = scmp.lt.u32.totalorder %s551_s10, %s660_s2 }
 0x2c7   :  { %p557_p9 = pnand %p555_p8, %p552_p7 }
 0x2c9   :  { %560 = shalt.err (!%p557_p9)
}
 0x2ca   :  { %364 = dma.vmem_to_hbm [thread:$0]  %s359_s6, 128, %s660_s2, [#allocation4], %s568_s19, %s568_s19, %s569_s20  }
 0x2cb   :  { %565 = dma.done.wait [#allocation4], 128  }
 0x2cc   :  { %566 = vsyncadd [#allocation4], 4294967168 }
 0x2cd   :  { %368 = vsyncpa [#allocation3], 1 }
 0x2ce   :  { %369 = vsyncpa [#allocation6], 1 }
 0x2cf   :  { %370 = vsyncpa [#allocation4], 1 }

</bundles_post_ra>
